<compile_context>
chip_gen: v5e
topology: v5e:2x2
jax: 0.10.0
libtpu: 0.0.40
codegen_flags: <defaults>
</compile_context>

<pallas_src>
import functools

import jax
import jax.numpy as jnp
from jax import lax
from jax.experimental import pallas as pl
from jax.experimental.pallas import tpu as pltpu

ALPHA = 1.0
GAMMA = 2.0  # statically 2 -> implemented as w * w below

_TILE_BYTES_BUDGET = 2 * 1024 * 1024  # per input buffer (x2 for double buffering)


def _round_up(x, m):
    return ((x + m - 1) // m) * m


def _cdiv(a, b):
    return -(-a // b)


# ---------------------------------------------------------------------------
# Kernel A: C < 128  -> classes on sublanes, batch on lanes (lane-dense).
#   x_ref: (C, TM) logits, t_ref: (1, TM) int32 targets,
#   out_ref: (1, 128) partial sum (lane 0 carries the value).
# ---------------------------------------------------------------------------
def _focal_kernel_classes_sublane(x_ref, t_ref, out_ref, *, n_valid, tm):
    i = pl.program_id(0)
    x = x_ref[...].astype(jnp.float32)                     # (C, TM)
    t = t_ref[...]                                         # (1, TM) int32

    # numerically-stable log-sum-exp over the class (sublane) axis
    m = jnp.max(x, axis=0, keepdims=True)                  # (1, TM)
    lse = m + jnp.log(jnp.sum(jnp.exp(x - m), axis=0, keepdims=True))

    # gather target logit with a one-hot mask (no cross-lane gather needed)
    cls = lax.broadcasted_iota(jnp.int32, x.shape, 0)      # (C, TM) class ids
    tgt = jnp.sum(jnp.where(cls == t, x, 0.0), axis=0, keepdims=True)

    ce = lse - tgt                                         # (1, TM) per-sample CE
    pt = jnp.exp(-ce)
    w = 1.0 - pt
    focal = ALPHA * (w * w) * ce                           # gamma == 2

    # mask out padded batch columns of the last tile
    col = i * tm + lax.broadcasted_iota(jnp.int32, (1, tm), 1)
    focal = jnp.where(col < n_valid, focal, 0.0)

    s = jnp.sum(focal)
    lane = lax.broadcasted_iota(jnp.int32, (1, 128), 1)
    out_ref[...] = jnp.where(lane == 0, s, 0.0)


# ---------------------------------------------------------------------------
# Kernel B: C >= 128 -> natural [N, C] layout (classes already lane-dense).
#   x_ref: (TM, C) logits, t_ref: (TM, 1) int32 targets,
#   out_ref: (1, 128) partial sum (lane 0 carries the value).
# ---------------------------------------------------------------------------
def _focal_kernel_batch_major(x_ref, t_ref, out_ref, *, n_valid, tm):
    i = pl.program_id(0)
    x = x_ref[...].astype(jnp.float32)                     # (TM, C)
    t = t_ref[...]                                         # (TM, 1) int32

    m = jnp.max(x, axis=-1, keepdims=True)                 # (TM, 1)
    lse = m + jnp.log(jnp.sum(jnp.exp(x - m), axis=-1, keepdims=True))

    cls = lax.broadcasted_iota(jnp.int32, x.shape, 1)      # (TM, C) class ids
    tgt = jnp.sum(jnp.where(cls == t, x, 0.0), axis=-1, keepdims=True)

    ce = lse - tgt                                         # (TM, 1)
    pt = jnp.exp(-ce)
    w = 1.0 - pt
    focal = ALPHA * (w * w) * ce

    row = i * tm + lax.broadcasted_iota(jnp.int32, (tm, 1), 0)
    focal = jnp.where(row < n_valid, focal, 0.0)

    s = jnp.sum(focal)
    lane = lax.broadcasted_iota(jnp.int32, (1, 128), 1)
    out_ref[...] = jnp.where(lane == 0, s, 0.0)


def _pick_tm_lane(n, c):
    """Batch on lanes: TM multiple of 128, VMEM-budgeted, capped by padded N."""
    tm = _TILE_BYTES_BUDGET // (c * 4)
    tm = max(128, min(2048, (tm // 128) * 128))
    return min(tm, _round_up(n, 128))


def _pick_tm_row(n, c):
    """Batch on sublanes: TM multiple of 8; targets pad lanes to 128 (128*4 B/row)."""
    per_row = c * 4 + 128 * 4
    tm = _TILE_BYTES_BUDGET // per_row
    tm = max(8, min(2048, (tm // 8) * 8))
    return min(tm, _round_up(n, 8))


def focal_loss(inputs, targets):
    """inputs: [N, C] float logits (f32 or bf16); targets: [N] int class indices."""
    n, c = inputs.shape
    t = targets.astype(jnp.int32)

    if c < 128:
        # Transposed working layout: classes on sublanes, batch lane-dense.
        tm = _pick_tm_lane(n, c)
        n_pad = _cdiv(n, tm) * tm
        num_tiles = n_pad // tm
        xt = inputs.T                                       # (C, N) layout plumbing
        if n_pad != n:
            xt = jnp.pad(xt, ((0, 0), (0, n_pad - n)))
            t = jnp.pad(t, (0, n_pad - n))
        t2d = t.reshape(1, n_pad)
        kernel = functools.partial(_focal_kernel_classes_sublane, n_valid=n, tm=tm)
        in_specs = [
            pl.BlockSpec((c, tm), lambda i: (0, i)),
            pl.BlockSpec((1, tm), lambda i: (0, i)),
        ]
        args = (xt, t2d)
    else:
        # Natural [N, C] layout; classes already fill the lane axis.
        tm = _pick_tm_row(n, c)
        n_pad = _cdiv(n, tm) * tm
        num_tiles = n_pad // tm
        x_p = inputs
        if n_pad != n:
            x_p = jnp.pad(inputs, ((0, n_pad - n), (0, 0)))
            t = jnp.pad(t, (0, n_pad - n))
        t2d = t.reshape(n_pad, 1)
        kernel = functools.partial(_focal_kernel_batch_major, n_valid=n, tm=tm)
        in_specs = [
            pl.BlockSpec((tm, c), lambda i: (i, 0)),
            pl.BlockSpec((tm, 1), lambda i: (i, 0)),
        ]
        args = (x_p, t2d)

    cost = pl.CostEstimate(
        flops=10 * n * c,
        transcendentals=n * c + 2 * n,              # exp over logits + exp/log per row
        bytes_accessed=n * c * inputs.dtype.itemsize + n * 4,
    )

    partials = pl.pallas_call(
        kernel,
        out_shape=jax.ShapeDtypeStruct((1, num_tiles * 128), jnp.float32),
        grid_spec=pltpu.PrefetchScalarGridSpec(
            num_scalar_prefetch=0,
            grid=(num_tiles,),
            in_specs=in_specs,
            out_specs=pl.BlockSpec((1, 128), lambda i: (0, i)),
        ),
        compiler_params=pltpu.CompilerParams(
            dimension_semantics=("parallel",),      # independent per-tile partial sums
        ),
        cost_estimate=cost,
    )(*args)

    # Tiny cross-tile reduction + mean by the TRUE N (padded rows were masked).
    return jnp.sum(partials) / n


def focal_loss_ref(inputs, targets):
    # pure-JAX reference, mirrors F.cross_entropy(reduction='none') + focal
    logp = jax.nn.log_softmax(inputs.astype(jnp.float32), axis=-1)
    ce = -jnp.take_along_axis(logp, targets[:, None], axis=-1)[:, 0]
    pt = jnp.exp(-ce)
    return jnp.mean(ALPHA * (1.0 - pt) ** GAMMA * ce)


if __name__ == "__main__":
    key = jax.random.PRNGKey(0)
    k1, k2, k3, k4 = jax.random.split(key, 4)

    # Path A: small class count (C=16 < 128) -> transposed lane-dense layout,
    # exercises batch padding/masking (200 -> 256).
    N1, C1 = 200, 16
    x1 = jax.random.normal(k1, (N1, C1), dtype=jnp.float32)
    t1 = jax.random.randint(k2, (N1,), 0, C1, dtype=jnp.int32)
    out1 = jax.block_until_ready(focal_loss(x1, t1))
    ref1 = focal_loss_ref(x1, t1)
    assert jnp.allclose(out1, ref1, rtol=1e-5, atol=1e-5), (out1, ref1)

    # Path B: C=128 -> batch-major layout, exercises row padding/masking (52 -> 56).
    N2, C2 = 52, 128
    x2 = jax.random.normal(k3, (N2, C2), dtype=jnp.float32)
    t2 = jax.random.randint(k4, (N2,), 0, C2, dtype=jnp.int32)
    out2 = jax.block_until_ready(focal_loss(x2, t2))
    ref2 = focal_loss_ref(x2, t2)
    assert jnp.allclose(out2, ref2, rtol=1e-5, atol=1e-5), (out2, ref2)

    # TODO(synk): no ignore_index handling — the reference nn.Module does not use it.
    print("KERNEL_OK")
</pallas_src>

<mosaic_0001>
module attributes {stable_mosaic.version = 11 : i64} {
  func.func @_focal_kernel_classes_sublane(%arg0: i32, %arg1: memref<16x256xf32, #tpu.memory_space<vmem>>, %arg2: memref<1x256xi32, #tpu.memory_space<vmem>>, %arg3: memref<1x128xf32, #tpu.memory_space<vmem>>) attributes {dimension_semantics = [#tpu.dimension_semantics<parallel>], iteration_bounds = array<i64: 1>, scalar_prefetch = 0 : i64, scratch_operands = 0 : i64, tpu.core_type = #tpu.core_type<tc>, window_params = [{transform_indices = @transform_0, window_bounds = array<i64: 16, 256>}, {transform_indices = @transform_1, window_bounds = array<i64: 1, 256>}, {transform_indices = @transform_2, window_bounds = array<i64: 1, 128>}]} {
    %c0 = arith.constant 0 : index
    %c0_0 = arith.constant 0 : index
    %0 = vector.load %arg1[%c0, %c0_0] : memref<16x256xf32, #tpu.memory_space<vmem>>, vector<16x256xf32>
    %c0_1 = arith.constant 0 : index
    %c0_2 = arith.constant 0 : index
    %1 = vector.load %arg2[%c0_1, %c0_2] : memref<1x256xi32, #tpu.memory_space<vmem>>, vector<1x256xi32>
    %cst = arith.constant dense<0xFF800000> : vector<256xf32>
    %2 = vector.multi_reduction <maximumf>, %0, %cst [0] : vector<16x256xf32> to vector<256xf32>
    %3 = vector.shape_cast %2 : vector<256xf32> to vector<1x256xf32>
    %4 = vector.broadcast %3 : vector<1x256xf32> to vector<16x256xf32>
    %5 = arith.subf %0, %4 : vector<16x256xf32>
    %6 = math.exp %5 : vector<16x256xf32>
    %cst_3 = arith.constant dense<0.000000e+00> : vector<256xf32>
    %7 = vector.multi_reduction <add>, %6, %cst_3 [0] : vector<16x256xf32> to vector<256xf32>
    %8 = vector.shape_cast %7 : vector<256xf32> to vector<1x256xf32>
    %9 = math.log %8 : vector<1x256xf32>
    %10 = arith.addf %3, %9 : vector<1x256xf32>
    %11 = tpu.iota {dimensions = array<i32: 0>} : vector<16x256xi32>
    %12 = vector.broadcast %1 : vector<1x256xi32> to vector<16x256xi32>
    %13 = arith.cmpi eq, %11, %12 : vector<16x256xi32>
    %cst_4 = arith.constant 0.000000e+00 : f32
    %14 = vector.broadcast %cst_4 : f32 to vector<16x256xf32>
    %15 = arith.select %13, %0, %14 : vector<16x256xi1>, vector<16x256xf32>
    %cst_5 = arith.constant dense<0.000000e+00> : vector<256xf32>
    %16 = vector.multi_reduction <add>, %15, %cst_5 [0] : vector<16x256xf32> to vector<256xf32>
    %17 = vector.shape_cast %16 : vector<256xf32> to vector<1x256xf32>
    %18 = arith.subf %10, %17 : vector<1x256xf32>
    %cst_6 = arith.constant 0.000000e+00 : f32
    %19 = vector.broadcast %cst_6 : f32 to vector<1x256xf32>
    %20 = arith.subf %19, %18 : vector<1x256xf32>
    %21 = math.exp %20 : vector<1x256xf32>
    %cst_7 = arith.constant 1.000000e+00 : f32
    %22 = vector.broadcast %cst_7 : f32 to vector<1x256xf32>
    %23 = arith.subf %22, %21 : vector<1x256xf32>
    %24 = arith.mulf %23, %23 : vector<1x256xf32>
    %cst_8 = arith.constant 1.000000e+00 : f32
    %25 = vector.broadcast %cst_8 : f32 to vector<1x256xf32>
    %26 = arith.mulf %25, %24 : vector<1x256xf32>
    %27 = arith.mulf %26, %18 : vector<1x256xf32>
    %c256_i32 = arith.constant 256 : i32
    %28 = arith.muli %arg0, %c256_i32 : i32
    %29 = tpu.iota {dimensions = array<i32: 1>} : vector<1x256xi32>
    %30 = vector.broadcast %28 : i32 to vector<1x256xi32>
    %31 = arith.addi %30, %29 : vector<1x256xi32>
    %c200_i32 = arith.constant 200 : i32
    %32 = vector.broadcast %c200_i32 : i32 to vector<1x256xi32>
    %33 = arith.cmpi slt, %31, %32 : vector<1x256xi32>
    %cst_9 = arith.constant 0.000000e+00 : f32
    %34 = vector.broadcast %cst_9 : f32 to vector<1x256xf32>
    %35 = arith.select %33, %27, %34 : vector<1x256xi1>, vector<1x256xf32>
    %36 = vector.shape_cast %35 : vector<1x256xf32> to vector<1x1x256xf32>
    %cst_10 = arith.constant dense<0.000000e+00> : vector<1xf32>
    %37 = vector.multi_reduction <add>, %36, %cst_10 [1, 2] : vector<1x1x256xf32> to vector<1xf32>
    %38 = vector.shape_cast %37 : vector<1xf32> to vector<1x1x1xf32>
    %39 = vector.extract %38[0, 0, 0] : f32 from vector<1x1x1xf32>
    %40 = tpu.iota {dimensions = array<i32: 1>} : vector<1x128xi32>
    %c0_i32 = arith.constant 0 : i32
    %41 = vector.broadcast %c0_i32 : i32 to vector<1x128xi32>
    %42 = arith.cmpi eq, %40, %41 : vector<1x128xi32>
    %cst_11 = arith.constant 0.000000e+00 : f32
    %43 = vector.broadcast %39 : f32 to vector<1x128xf32>
    %44 = vector.broadcast %cst_11 : f32 to vector<1x128xf32>
    %45 = arith.select %42, %43, %44 : vector<1x128xi1>, vector<1x128xf32>
    %c0_12 = arith.constant 0 : index
    %c0_13 = arith.constant 0 : index
    %46 = vector.load %arg3[%c0_12, %c0_13] : memref<1x128xf32, #tpu.memory_space<vmem>>, vector<1x128xf32>
    tpu.vector_store %arg3[%c0_12, %c0_13], %45 {strides = array<i32>} : memref<1x128xf32, #tpu.memory_space<vmem>>, vector<1x128xf32>,
    return
  }
  func.func @transform_0(%arg0: i32) -> (i32, i32) {
    %c0_i32 = arith.constant 0 : i32
    %c0_i32_0 = arith.constant 0 : i32
    return %c0_i32, %arg0 : i32, i32
  }
  func.func @transform_1(%arg0: i32) -> (i32, i32) {
    %c0_i32 = arith.constant 0 : i32
    %c0_i32_0 = arith.constant 0 : i32
    return %c0_i32, %arg0 : i32, i32
  }
  func.func @transform_2(%arg0: i32) -> (i32, i32) {
    %c0_i32 = arith.constant 0 : i32
    %c0_i32_0 = arith.constant 0 : i32
    return %c0_i32, %arg0 : i32, i32
  }
}

</mosaic_0001>

<bundles_post_ra>
// kernel: tpu_custom_call.1
= control target key start
LH: loop header
LB: loop body
LE: loop exit
PB: predicated region body
PF: predicated region fallthrough
CT: control target
= control target key end

     0   :  { %7 = vsyncpa [#allocation3], 0  ;;  %s322_s0 = inlined_call_operand.hbm [shape: f32[16,256], index: 0, kind: input, shape index: {}]   ;;  %s323_s1 = inlined_call_operand.hbm [shape: s32[1,256], index: 1, kind: input, shape index: {}]   ;;  %s324_s2 = inlined_call_operand.hbm [shape: f32[1,128], index: 2, kind: output, shape index: {}]  }
   0x1   :  { %8 = vsyncpa [#allocation6], 0 }
   0x2   :  { %9 = vsyncpa [#allocation4], 0  ;;  %s14_s11 = sshll.u32 %s322_s0, 4  ;;  %s281_s12 = smov [#allocation2]   ;;  %s15_s11 = int_to_ptr.hbm [resolvable:$true] %s14_s11 }
   0x3   :  { %s16_s13 = sshll.u32 %s281_s12, 4  ;;  %s28_s16 = sshll.u32 %s323_s1, 4  ;;  %s17_s13 = int_to_ptr.vmem [resolvable:$true] %s16_s13  ;;  %s29_s16 = int_to_ptr.hbm [resolvable:$true] %s28_s16 }
   0x4   :  { %s282_s17 = smov 256   ;;  %s283_s18 = smov 16  }
   0x5   :  { %22 = dma.hbm_to_vmem [thread:$0]  %s15_s11, 512, %s17_s13, [#allocation3], %s282_s17, %s282_s17, %s283_s18  }
   0x6   :  { %s284_s19 = smov [#allocation5]  }
   0x7   :  { %s30_s20 = sshll.u32 %s284_s19, 4  ;;  %s31_s20 = int_to_ptr.vmem [resolvable:$true] %s30_s20 }
   0x8   :  { %33 = dma.hbm_to_vmem [thread:$0]  %s29_s16, 32, %s31_s20, [#allocation6]  }
   0x9   :  { %275 = dma.done.wait [#allocation3], 512  }
   0xa   :  { %276 = vsyncadd [#allocation3], 4294966784 }
   0xb   :  { %277 = dma.done.wait [#allocation6], 32  }
   0xc   :  { %278 = vsyncadd [#allocation6], 4294967264  ;;  %v42_v0 = vld [vmem:[#allocation2] sm:$0xff]  ;;  %v43_v1 = vld [vmem:[#allocation2 + $0x8] sm:$0xff]  ;;  %v93_v11 = vlaneseq  ;;  %vm145_vm4 = vcmask 1040384   ;;  %s285_s0 = smov [#allocation7]  }
   0xd   :  { %v44_v2 = vld [vmem:[#allocation2 + $0x10] sm:$0xff]  ;;  %v45_v3 = vld [vmem:[#allocation2 + $0x18] sm:$0xff]  ;;  %v46_v17 = vld [vmem:[#allocation5] sm:$0x3]  ;;  %s167_s1 = sshll.u32 %s285_s0, 4  ;;  %s169_s23 = sshll.u32 %s324_s2, 4  ;;  %s168_s1 = int_to_ptr.vmem [resolvable:$true] %s167_s1  ;;  %s170_s23 = int_to_ptr.hbm [resolvable:$true] %s169_s23 }
   0xe   :  { %v47_v4 = vmax.f32 %v42_v0, %v44_v2  ;;  %v54_v5 = vmax.f32 %v43_v1, %v45_v3  ;;  %v94_v16 = vshrl.u32 %v93_v11, 7  ;;  %v96_v24 = vperm.slane %v46_v17, 0 }
   0xf   :  { %v97_v27 = vperm.slane %v46_v17, 1  ;;  %v136_v17 = vand.u32 127, %v93_v11 }
  0x10   :  { %v48_v6 = vrot.slane %v47_v4, 4  ;;  %v55_v7 = vrot.slane %v54_v5, 4  ;;  %v95_v23 = vadd.s32 8, %v94_v16  ;;  %vm98_vm0 = vcmp.eq.s32.totalorder %v94_v16, %v96_v24 }
  0x11   :  { %vm99_vm2 = vcmp.eq.s32.totalorder %v94_v16, %v97_v27  ;;  %v102_v32 = vsel %vm98_vm0, %v42_v0, 0.0  ;;  %vm158_vm6 = vcmp.eq.s32.totalorder %v136_v17, 0 }
  0x12   :  { %v49_v8 = vmax.f32 %v47_v4, %v48_v6  ;;  %v56_v9 = vmax.f32 %v54_v5, %v55_v7  ;;  %vm100_vm1 = vcmp.eq.s32.totalorder %v95_v23, %v96_v24  ;;  %vm101_vm3 = vcmp.eq.s32.totalorder %v95_v23, %v97_v27 }
  0x13   :  { %v104_v33 = vsel %vm100_vm1, %v44_v2, 0.0  ;;  %v103_v34 = vsel %vm99_vm2, %v43_v1, 0.0  ;;  %v105_v35 = vsel %vm101_vm3, %v45_v3, 0.0  ;;  %v137_v23 = vadd.s32 128, %v136_v17 }
  0x14   :  { %v50_v10 = vrot.slane %v49_v8, 2  ;;  %v57_v12 = vrot.slane %v56_v9, 2  ;;  %v106_v37 = vadd.f32 %v104_v33, %v102_v32  ;;  %v113_v39 = vadd.f32 %v105_v35, %v103_v34 }
  0x15   :  { %vm142_vm5 = vcmp.lt.s32.totalorder %v137_v23, 200 }
  0x16   :  { %v51_v13 = vmax.f32 %v49_v8, %v50_v10  ;;  %v58_v14 = vmax.f32 %v56_v9, %v57_v12  ;;  %v107_v44 = vrot.slane %v106_v37, 4  ;;  %v114_v46 = vrot.slane %v113_v39, 4 }
  0x18   :  { %v52_v15 = vrot.slane %v51_v13, 1  ;;  %v59_v18 = vrot.slane %v58_v14, 1  ;;  %v108_v50 = vadd.f32 %v107_v44, %v106_v37  ;;  %v115_v52 = vadd.f32 %v114_v46, %v113_v39 }
  0x1a   :  { %v308_v19 = vmax.f32 %v51_v13, %v52_v15  ;;  %v310_v20 = vmax.f32 %v58_v14, %v59_v18  ;;  %v109_v56 = vrot.slane %v108_v50, 2  ;;  %v116_v58 = vrot.slane %v115_v52, 2 }
  0x1c   :  { %v61_v21 = vsub.f32 %v42_v0, %v308_v19  ;;  %v63_v22 = vsub.f32 %v44_v2, %v308_v19  ;;  %v62_v25 = vsub.f32 %v43_v1, %v310_v20  ;;  %v64_v26 = vsub.f32 %v45_v3, %v310_v20 }
  0x1d   :  { %v110_v62 = vadd.f32 %v109_v56, %v108_v50  ;;  %v117_v63 = vadd.f32 %v116_v58, %v115_v52 }
  0x1e   :  { %v65_v28 = vmul.f32 1.442695, %v61_v21  ;;  %v69_v29 = vmul.f32 1.442695, %v63_v22  ;;  %v67_v30 = vmul.f32 1.442695, %v62_v25 }
  0x1f   :  { %v71_v31 = vmul.f32 1.442695, %v64_v26  ;;  %v111_v0 = vrot.slane %v110_v62, 1  ;;  %v118_v1 = vrot.slane %v117_v63, 1 }
  0x20   :  { %187 = vpow2.f32 %v65_v28 }
  0x21   :  { %189 = vpow2.f32 %v67_v30  ;;  %v112_v5 = vadd.f32 %v111_v0, %v110_v62  ;;  %v119_v7 = vadd.f32 %v118_v1, %v117_v63 }
  0x22   :  { %191 = vpow2.f32 %v69_v29 }
  0x23   :  { %193 = vpow2.f32 %v71_v31 }
  0x26   :  { %v188_v36 = vpop.eup %187 }
  0x27   :  { %v190_v38 = vpop.eup %189 }
  0x28   :  { %v192_v40 = vpop.eup %191 }
  0x29   :  { %v194_v41 = vpop.eup %193  ;;  %v73_v42 = vadd.f32 %v192_v40, %v188_v36 }
  0x2a   :  { %v80_v43 = vadd.f32 %v194_v41, %v190_v38 }
  0x2b   :  { %v74_v45 = vrot.slane %v73_v42, 4 }
  0x2c   :  { %v81_v47 = vrot.slane %v80_v43, 4 }
  0x2d   :  { %v75_v48 = vadd.f32 %v74_v45, %v73_v42 }
  0x2e   :  { %v82_v49 = vadd.f32 %v81_v47, %v80_v43 }
  0x2f   :  { %v76_v51 = vrot.slane %v75_v48, 2 }
  0x30   :  { %v83_v53 = vrot.slane %v82_v49, 2 }
  0x31   :  { %v77_v54 = vadd.f32 %v76_v51, %v75_v48 }
  0x32   :  { %v84_v55 = vadd.f32 %v83_v53, %v82_v49 }
  0x33   :  { %v78_v57 = vrot.slane %v77_v54, 1 }
  0x34   :  { %v85_v59 = vrot.slane %v84_v55, 1 }
  0x35   :  { %v79_v60 = vadd.f32 %v78_v57, %v77_v54 }
  0x36   :  { %v86_v61 = vadd.f32 %v85_v59, %v84_v55 }
  0x37   :  { %195 = vlog2.f32 %v79_v60 }
  0x38   :  { %197 = vlog2.f32 %v86_v61 }
  0x3d   :  { %v196_v2 = vpop.eup %195 }
  0x3e   :  { %v198_v3 = vpop.eup %197  ;;  %v88_v4 = vmul.f32 0.6931472, %v196_v2 }
  0x3f   :  { %v90_v6 = vmul.f32 0.6931472, %v198_v3 }
  0x40   :  { %v91_v8 = vadd.f32 %v88_v4, %v308_v19 }
  0x41   :  { %v92_v9 = vadd.f32 %v90_v6, %v310_v20 }
  0x42   :  { %v120_v10 = vsub.f32 %v91_v8, %v112_v5 }
  0x43   :  { %v121_v12 = vsub.f32 %v92_v9, %v119_v7 }
  0x44   :  { %v122_v13 = vsub.f32 0.0, %v120_v10 }
  0x45   :  { %v123_v14 = vsub.f32 0.0, %v121_v12 }
  0x46   :  { %v124_v15 = vmul.f32 1.442695, %v122_v13 }
  0x47   :  { %v126_v16 = vmul.f32 1.442695, %v123_v14 }
  0x48   :  { %199 = vpow2.f32 %v124_v15 }
  0x49   :  { %201 = vpow2.f32 %v126_v16 }
  0x4e   :  { %v200_v18 = vpop.eup %199 }
  0x4f   :  { %v202_v21 = vpop.eup %201  ;;  %v128_v22 = vsub.f32 1.0, %v200_v18 }
  0x50   :  { %v129_v24 = vsub.f32 1.0, %v202_v21 }
  0x51   :  { %v130_v25 = vmul.f32 %v128_v22, %v128_v22 }
  0x52   :  { %v131_v26 = vmul.f32 %v129_v24, %v129_v24 }
  0x53   :  { %v132_v19 = vmul.f32 %v130_v25, %v120_v10 }
  0x54   :  { %v133_v20 = vmul.f32 %v131_v26, %v121_v12 }
  0x55   :  { %v146_v27 = vsel %vm145_vm4, %v132_v19, 0.0 }
  0x56   :  { %v144_v28 = vsel %vm142_vm5, %v133_v20, 0.0 }
  0x57   :  { %v147_v29 = vsel %vm145_vm4, %v144_v28, 0.0 }
  0x58   :  { %v148_v30 = vadd.f32 %v147_v29, %v146_v27 }
  0x5a   :  { %149 = vadd.xlane.f32.xlu0 %v148_v30 }
  0xcd   :  { %v150_v31 = vpop.xlane.xlu0 %149 }
  0xce   :  { %v151_v32 = vrot.slane %v150_v31, 4 }
  0xd0   :  { %v152_v33 = vadd.f32 %v151_v32, %v150_v31 }
  0xd2   :  { %v153_v11 = vrot.slane %v152_v33, 2 }
  0xd4   :  { %v154_v34 = vadd.f32 %v153_v11, %v152_v33 }
  0xd6   :  { %v155_v35 = vrot.slane %v154_v34, 1 }
  0xd8   :  { %v156_v36 = vadd.f32 %v155_v35, %v154_v34 }
  0xda   :  { %180 = vpush %v156_v36 }
 0x10b   :  { %s181_s24 = spop %180 }
 0x10c   :  { %v159_v37 = vstv %s181_s24 }
 0x10d   :  { %v160_v38 = vsel %vm158_vm6, %v159_v37, 0.0 }
 0x10e   :  { %161 = vst [vmem:[#allocation7] sm:$0x1] %v160_v38 }
 0x10f   :  { %172 = dma.vmem_to_hbm [thread:$0]  %s168_s1, 16, %s170_s23, [#allocation4]  }
 0x110   :  { %279 = dma.done.wait [#allocation4], 16  }
 0x111   :  { %280 = vsyncadd [#allocation4], 4294967280 }
 0x112   :  { %177 = vsyncpa [#allocation3], 1 }
 0x113   :  { %178 = vsyncpa [#allocation6], 1 }
 0x114   :  { %179 = vsyncpa [#allocation4], 1 }

</bundles_post_ra>
